<compile_context>
chip_gen: v6e
topology: v6e:2x2x1
jax: 0.10.0
libtpu: 0.0.40
codegen_flags: <defaults>
</compile_context>

<pallas_src>
import functools

import jax
import jax.numpy as jnp
from jax.experimental import pallas as pl
from jax.experimental.pallas import tpu as pltpu


def _p_layer_kernel(c_ref, x_ref, w_ref, jw_ref, o_ref, *, max_degree):
    """c_ref: SMEM (max_degree,) Horner coeffs (h folded in); x: (F, TB); w/jw: (F, 1)."""
    x = x_ref[...]                                # (F, TB), native dtype
    xf = x.astype(jnp.float32)
    w = w_ref[...].astype(jnp.float32)            # (F, 1)
    jw = jw_ref[...].astype(jnp.float32)          # (F, 1)

    # monomial m = w^T x  -> (1, TB): sublane (axis-0) reduce, lane-dense result.
    m = jnp.sum(xf * w, axis=0, keepdims=True)

    # h * polynomial_derivative via Horner:  sum_p c[p] * m**p,  p = 0..max_degree-1
    pd = jnp.full_like(m, c_ref[max_degree - 1])
    for p in range(max_degree - 2, -1, -1):
        pd = pd * m + c_ref[p]

    # out = x + (h * pd') * Jw ; pd (1, TB) * jw (F, 1) broadcasts to (F, TB)
    o_ref[...] = (xf + pd * jw).astype(o_ref.dtype)


def p_layer_forward(x, h, a, w, *, dim, min_degree=2, max_degree=4):
    """x: (B, 2*dim), h: scalar step size, a: (max_degree-min_degree+1,), w: (2*dim,)."""
    B, F = x.shape
    assert F == 2 * dim, "x last dim must be 2*dim (keepdim=False convention)"
    assert 1 <= min_degree <= max_degree, "kernel assumes 1 <= min_degree <= max_degree"
    # TODO(synk): keepdim=True parameterization (w of length dim) not implemented.

    # canonical_symplectic_transformation(w) = J @ w with J = [[0, I], [-I, 0]]
    # TODO(synk): symplectic_matrix_transformation_2d(w, i) path (integer `i`) not implemented.
    w = jnp.asarray(w, dtype=jnp.float32)
    jw = jnp.concatenate([w[dim:], -w[:dim]])

    # Horner coefficients over powers of the monomial m:
    #   c[p] = h * (p+1) * a[(p+1) - min_degree]   if p+1 >= min_degree else 0
    a = jnp.asarray(a, dtype=jnp.float32)
    h_f = jnp.asarray(h, dtype=jnp.float32)
    zero = jnp.zeros((), dtype=jnp.float32)
    c_list = []
    for i in range(1, max_degree + 1):
        c_list.append(float(i) * a[i - min_degree] if i >= min_degree else zero)
    c = (h_f * jnp.stack(c_list)).astype(jnp.float32)          # (max_degree,)

    # Feature-major, lane-dense layout + batch tiling.
    xt = x.T                                                   # (F, B)
    TB = min(4096, ((B + 127) // 128) * 128)                   # lane tile, multiple of 128
    B_pad = pl.cdiv(B, TB) * TB
    if B_pad != B:
        xt = jnp.pad(xt, ((0, 0), (0, B_pad - B)))             # padded cols sliced off below
    grid = (B_pad // TB,)

    w_col = w.reshape(F, 1)
    jw_col = jw.reshape(F, 1)

    kernel = functools.partial(_p_layer_kernel, max_degree=max_degree)

    out_t = pl.pallas_call(
        kernel,
        out_shape=jax.ShapeDtypeStruct((F, B_pad), x.dtype),
        grid=grid,
        in_specs=[
            pl.BlockSpec(memory_space=pltpu.MemorySpace.SMEM),   # c (Horner coeffs, h folded)
            pl.BlockSpec((F, TB), lambda i: (0, i)),             # x tile (feature-major)
            pl.BlockSpec((F, 1), lambda i: (0, 0)),              # w column (resident)
            pl.BlockSpec((F, 1), lambda i: (0, 0)),              # J w column (resident)
        ],
        out_specs=pl.BlockSpec((F, TB), lambda i: (0, i)),
        compiler_params=pltpu.CompilerParams(
            dimension_semantics=("parallel",)),
    )(c, xt, w_col, jw_col)

    return out_t[:, :B].T


def _reference_forward(x, h, a, w, *, dim, min_degree=2, max_degree=4):
    """Pure-JAX reference mirroring the PyTorch module."""
    monomial = (x @ w)[..., None]                                 # (B, 1)
    pd = sum(i * a[i - min_degree] * monomial ** (i - 1)
             for i in range(min_degree, max_degree + 1))
    jw = jnp.concatenate([w[dim:], -w[:dim]])
    return x + h * pd * jw


if __name__ == "__main__":
    dim = 4
    min_degree, max_degree = 2, 4
    F = 2 * dim
    h = 0.1

    key = jax.random.PRNGKey(0)
    ka, kw, kx1, kx2 = jax.random.split(key, 4)

    # deterministic stand-ins for get_parameters(...)
    a = 0.1 * jax.random.normal(ka, (max_degree - min_degree + 1,), dtype=jnp.float32)
    w = 0.1 * jax.random.normal(kw, (F,), dtype=jnp.float32)

    ok = True
    for kx, batch in ((kx1, 300), (kx2, 8)):      # exercises lane padding / small-batch path
        x = jax.random.normal(kx, (batch, F), dtype=jnp.float32)

        out = p_layer_forward(x, h, a, w, dim=dim,
                              min_degree=min_degree, max_degree=max_degree)
        out = jax.block_until_ready(out)

        ref = _reference_forward(x, h, a, w, dim=dim,
                                 min_degree=min_degree, max_degree=max_degree)
        ok = ok and (out.shape == (batch, F)) and bool(
            jnp.allclose(out, ref, atol=1e-5, rtol=1e-5))

    assert ok, "mismatch vs reference"
    print("KERNEL_OK")
</pallas_src>

<mosaic_0001>
module attributes {stable_mosaic.version = 11 : i64} {
  func.func @_p_layer_kernel(%arg0: i32, %arg1: memref<4xf32, #tpu.memory_space<smem>>, %arg2: memref<8x384xf32, #tpu.memory_space<vmem>>, %arg3: memref<8x1xf32, #tpu.memory_space<vmem>>, %arg4: memref<8x1xf32, #tpu.memory_space<vmem>>, %arg5: memref<8x384xf32, #tpu.memory_space<vmem>>) attributes {dimension_semantics = [#tpu.dimension_semantics<parallel>], iteration_bounds = array<i64: 1>, scalar_prefetch = 0 : i64, scratch_operands = 0 : i64, tpu.core_type = #tpu.core_type<tc>, window_params = [{transform_indices = @transform_0, window_bounds = array<i64: 4>}, {transform_indices = @transform_1, window_bounds = array<i64: 8, 384>}, {pipeline_mode = #tpu.pipeline_mode<synchronous>, transform_indices = @transform_2, window_bounds = array<i64: 8, 1>}, {pipeline_mode = #tpu.pipeline_mode<synchronous>, transform_indices = @transform_3, window_bounds = array<i64: 8, 1>}, {transform_indices = @transform_4, window_bounds = array<i64: 8, 384>}]} {
    %c0 = arith.constant 0 : index
    %c0_0 = arith.constant 0 : index
    %0 = vector.load %arg2[%c0, %c0_0] : memref<8x384xf32, #tpu.memory_space<vmem>>, vector<8x384xf32>
    %c0_1 = arith.constant 0 : index
    %c0_2 = arith.constant 0 : index
    %1 = vector.load %arg3[%c0_1, %c0_2] : memref<8x1xf32, #tpu.memory_space<vmem>>, vector<8x1xf32>
    %c0_3 = arith.constant 0 : index
    %c0_4 = arith.constant 0 : index
    %2 = vector.load %arg4[%c0_3, %c0_4] : memref<8x1xf32, #tpu.memory_space<vmem>>, vector<8x1xf32>
    %3 = vector.broadcast %1 : vector<8x1xf32> to vector<8x384xf32>
    %4 = arith.mulf %0, %3 : vector<8x384xf32>
    %cst = arith.constant dense<0.000000e+00> : vector<384xf32>
    %5 = vector.multi_reduction <add>, %4, %cst [0] : vector<8x384xf32> to vector<384xf32>
    %6 = vector.shape_cast %5 : vector<384xf32> to vector<1x384xf32>
    %c3 = arith.constant 3 : index
    %7 = memref.load %arg1[%c3] : memref<4xf32, #tpu.memory_space<smem>>
    %8 = vector.broadcast %7 : f32 to vector<1x384xf32>
    %9 = arith.mulf %8, %6 : vector<1x384xf32>
    %c2 = arith.constant 2 : index
    %10 = memref.load %arg1[%c2] : memref<4xf32, #tpu.memory_space<smem>>
    %11 = vector.broadcast %10 : f32 to vector<1x384xf32>
    %12 = arith.addf %9, %11 : vector<1x384xf32>
    %13 = arith.mulf %12, %6 : vector<1x384xf32>
    %c1 = arith.constant 1 : index
    %14 = memref.load %arg1[%c1] : memref<4xf32, #tpu.memory_space<smem>>
    %15 = vector.broadcast %14 : f32 to vector<1x384xf32>
    %16 = arith.addf %13, %15 : vector<1x384xf32>
    %17 = arith.mulf %16, %6 : vector<1x384xf32>
    %c0_5 = arith.constant 0 : index
    %18 = memref.load %arg1[%c0_5] : memref<4xf32, #tpu.memory_space<smem>>
    %19 = vector.broadcast %18 : f32 to vector<1x384xf32>
    %20 = arith.addf %17, %19 : vector<1x384xf32>
    %21 = vector.broadcast %20 : vector<1x384xf32> to vector<8x384xf32>
    %22 = vector.broadcast %2 : vector<8x1xf32> to vector<8x384xf32>
    %23 = arith.mulf %21, %22 : vector<8x384xf32>
    %24 = arith.addf %0, %23 : vector<8x384xf32>
    %c0_6 = arith.constant 0 : index
    %c0_7 = arith.constant 0 : index
    %25 = vector.load %arg5[%c0_6, %c0_7] : memref<8x384xf32, #tpu.memory_space<vmem>>, vector<8x384xf32>
    tpu.vector_store %arg5[%c0_6, %c0_7], %24 {strides = array<i32>} : memref<8x384xf32, #tpu.memory_space<vmem>>, vector<8x384xf32>,
    return
  }
  func.func @transform_0(%arg0: i32) -> i32 {
    %c0_i32 = arith.constant 0 : i32
    %c0_i32_0 = arith.constant 0 : i32
    return %c0_i32 : i32
  }
  func.func @transform_1(%arg0: i32) -> (i32, i32) {
    %c0_i32 = arith.constant 0 : i32
    %c0_i32_0 = arith.constant 0 : i32
    return %c0_i32, %arg0 : i32, i32
  }
  func.func @transform_2(%arg0: i32) -> (i32, i32) {
    %c0_i32 = arith.constant 0 : i32
    %c0_i32_0 = arith.constant 0 : i32
    %c0_i32_1 = arith.constant 0 : i32
    return %c0_i32, %c0_i32_0 : i32, i32
  }
  func.func @transform_3(%arg0: i32) -> (i32, i32) {
    %c0_i32 = arith.constant 0 : i32
    %c0_i32_0 = arith.constant 0 : i32
    %c0_i32_1 = arith.constant 0 : i32
    return %c0_i32, %c0_i32_0 : i32, i32
  }
  func.func @transform_4(%arg0: i32) -> (i32, i32) {
    %c0_i32 = arith.constant 0 : i32
    %c0_i32_0 = arith.constant 0 : i32
    return %c0_i32, %arg0 : i32, i32
  }
}

</mosaic_0001>

<bundles_post_ra>
// kernel: tpu_custom_call.1
= control target key start
LH: loop header
LB: loop body
LE: loop exit
PB: predicated region body
PF: predicated region fallthrough
CT: control target
= control target key end

     0   :  { %9 = vsyncpa [#allocation5], 0  ;;  %s240_s0 = inlined_call_operand.vmem [shape: f32[4], index: 0, kind: input, shape index: {}]   ;;  %s241_s1 = inlined_call_operand.hbm [shape: f32[8,384], index: 1, kind: input, shape index: {}]   ;;  %s242_s2 = inlined_call_operand.vmem [shape: f32[8,1], index: 2, kind: input, shape index: {}]   ;;  %s243_s3 = inlined_call_operand.vmem [shape: f32[8,1], index: 3, kind: input, shape index: {}]   ;;  %s244_s4 = inlined_call_operand.hbm [shape: f32[8,384], index: 4, kind: output, shape index: {}]  }
   0x1   :  { %10 = vsyncpa [#allocation3], 0 }
   0x2   :  { %11 = vsyncpa [#allocation4], 0  ;;  %s18_s17 = sshll.u32 %s240_s0, 4  ;;  %s19_s17 = int_to_ptr.vmem [resolvable:$true] %s18_s17 }
   0x3   :  { %s138_s18 = scalar_lea.vmem %s19_s17, 16  ;;  %p143_p1 = scmp.lt.s32.totalorder %s19_s17, %s19_s17 }
   0x4   :  { %p139_p0 = scmp.ne.s32.totalorder %s19_s17, %s138_s18  ;;  %p144_p2 = scmp.lt.s32.totalorder %s138_s18, %s138_s18 }
   0x6   :  { %p145_p3 = por %p144_p2, %p143_p1 }
   0x8   :  { %p146_p4 = pnand %p145_p3, %p139_p0 }
   0xa   :  { %149 = shalt.err (!%p146_p4)
}
   0xb   :  { %s196_s19 = smov [#allocation2]   ;;  %s197_s20 = smov [#allocation6]  }
   0xc   :  { %21 = dma.vmem_to_smem %s19_s17, 16, %s196_s19, [#allocation5]  }
   0xd   :  { %s28_s21 = sshll.u32 %s197_s20, 4  ;;  %s29_s21 = int_to_ptr.vmem [resolvable:$true] %s28_s21 }
   0xe   :  { %s158_s22 = scalar_lea.vmem %s29_s21, 384  ;;  %p163_p6 = scmp.lt.s32.totalorder %s29_s21, %s29_s21 }
   0xf   :  { %p159_p5 = scmp.ne.s32.totalorder %s29_s21, %s158_s22  ;;  %p164_p7 = scmp.lt.s32.totalorder %s158_s22, %s158_s22 }
  0x11   :  { %p165_p8 = por %p164_p7, %p163_p6 }
  0x13   :  { %p166_p9 = pnand %p165_p8, %p159_p5 }
  0x15   :  { %169 = shalt.err (!%p166_p9)
}
  0x16   :  { %31 = dma.hbm_to_vmem [thread:$0]  %s241_s1, 384, %s29_s21, [#allocation3]  }
  0x17   :  { %190 = dma.done.wait [#allocation5], 16  }
  0x18   :  { %191 = vsyncadd [#allocation5], 4294967280 }
  0x19   :  { %192 = dma.done.wait [#allocation3], 384  }
  0x1a   :  { %193 = vsyncadd [#allocation3], 4294966912 }
  0x1b   :  { %42 = sfence }
  0x1c   :  { %v46_v0 = vld [vmem:[%s242_s2] sm:$0xff]  ;;  %v198_v1 = vmov 0   ;;  %v44_v4 = vld [vmem:[#allocation6 + $0x8] sm:$0xff]  ;;  %v45_v5 = vld [vmem:[#allocation6 + $0x10] sm:$0xff]  ;;  %s130_s1 = sld [smem:[#allocation2 + $0x3]]  ;;  %s199_s29 = smov [#allocation7]  }
  0x1d   :  { %137 = vset.pattern.permute.xlu0 %v198_v1  ;;  %v47_v2 = vld [vmem:[%s243_s3] sm:$0xff]  ;;  %s131_s2 = sld [smem:[#allocation2 + $0x2]]  ;;  %s120_s30 = sshll.u32 %s199_s29, 4  ;;  %s121_s30 = int_to_ptr.vmem [resolvable:$true] %s120_s30 }
  0x1e   :  { %50 = vperm.xlu0 %137, %v46_v0   ;;  %v43_v3 = vld [vmem:[#allocation6] sm:$0xff]  ;;  %s132_s3 = sld [smem:[#allocation2 + $0x1]]  ;;  %s170_s5 = scalar_lea.vmem %s121_s30, 384 }
  0x1f   :  { %s95_s28 = sld [smem:[#allocation2]]  ;;  %p171_p10 = scmp.ne.s32.totalorder %s121_s30, %s170_s5 }
  0x20   :  { %p175_p11 = scmp.lt.s32.totalorder %s121_s30, %s121_s30  ;;  %p176_p12 = scmp.lt.s32.totalorder %s170_s5, %s170_s5 }
  0x22   :  { %102 = vperm.xlu0 %137, %v47_v2   ;;  %v75_v25 = vstv %s130_s1  ;;  %p177_p13 = por %p176_p12, %p175_p11 }
  0x23   :  { %v80_v29 = vstv %s131_s2 }
  0x24   :  { %v88_v36 = vstv %s132_s3  ;;  %p178_p0 = pnand %p177_p13, %p171_p10 }
  0x25   :  { %v96_v43 = vstv %s95_s28 }
  0x99   :  { %v51_v6 = vpop.permute.xlu0 %50 }
  0x9a   :  { %v53_v7 = vmul.f32 %v51_v6, %v43_v3  ;;  %v54_v8 = vmul.f32 %v51_v6, %v44_v4  ;;  %v55_v9 = vmul.f32 %v51_v6, %v45_v5 }
  0x9c   :  { %v56_v10 = vrot.slane %v53_v7, 4  ;;  %v62_v11 = vrot.slane %v54_v8, 4  ;;  %v68_v12 = vrot.slane %v55_v9, 4 }
  0x9d   :  { %v103_v50 = vpop.permute.xlu0 %102 }
  0x9e   :  { %v57_v13 = vadd.f32 %v56_v10, %v53_v7  ;;  %v63_v14 = vadd.f32 %v62_v11, %v54_v8  ;;  %v69_v15 = vadd.f32 %v68_v12, %v55_v9 }
  0xa0   :  { %v58_v16 = vrot.slane %v57_v13, 2  ;;  %v64_v17 = vrot.slane %v63_v14, 2  ;;  %v70_v18 = vrot.slane %v69_v15, 2 }
  0xa2   :  { %v59_v19 = vadd.f32 %v58_v16, %v57_v13  ;;  %v65_v20 = vadd.f32 %v64_v17, %v63_v14  ;;  %v71_v21 = vadd.f32 %v70_v18, %v69_v15 }
  0xa4   :  { %v60_v22 = vrot.slane %v59_v19, 1  ;;  %v66_v23 = vrot.slane %v65_v20, 1  ;;  %v72_v24 = vrot.slane %v71_v21, 1 }
  0xa6   :  { %v61_v26 = vadd.f32 %v60_v22, %v59_v19  ;;  %v67_v27 = vadd.f32 %v66_v23, %v65_v20  ;;  %v73_v28 = vadd.f32 %v72_v24, %v71_v21 }
  0xa8   :  { %v76_v30 = vmul.f32 %v75_v25, %v61_v26  ;;  %v77_v31 = vmul.f32 %v75_v25, %v67_v27  ;;  %v78_v32 = vmul.f32 %v75_v25, %v73_v28 }
  0xaa   :  { %v81_v33 = vadd.f32 %v80_v29, %v76_v30  ;;  %v82_v34 = vadd.f32 %v80_v29, %v77_v31  ;;  %v83_v35 = vadd.f32 %v80_v29, %v78_v32 }
  0xac   :  { %v84_v37 = vmul.f32 %v81_v33, %v61_v26  ;;  %v85_v38 = vmul.f32 %v82_v34, %v67_v27  ;;  %v86_v39 = vmul.f32 %v83_v35, %v73_v28 }
  0xae   :  { %v89_v40 = vadd.f32 %v88_v36, %v84_v37  ;;  %v90_v41 = vadd.f32 %v88_v36, %v85_v38  ;;  %v91_v42 = vadd.f32 %v88_v36, %v86_v39 }
  0xb0   :  { %v92_v44 = vmul.f32 %v89_v40, %v61_v26  ;;  %v93_v45 = vmul.f32 %v90_v41, %v67_v27  ;;  %v94_v46 = vmul.f32 %v91_v42, %v73_v28 }
  0xb2   :  { %v97_v47 = vadd.f32 %v96_v43, %v92_v44  ;;  %v98_v48 = vadd.f32 %v96_v43, %v93_v45  ;;  %v99_v49 = vadd.f32 %v96_v43, %v94_v46 }
  0xb4   :  { %v105_v51 = vmul.f32 %v103_v50, %v97_v47  ;;  %v106_v52 = vmul.f32 %v103_v50, %v98_v48  ;;  %v107_v53 = vmul.f32 %v103_v50, %v99_v49 }
  0xb6   :  { %v108_v54 = vadd.f32 %v105_v51, %v43_v3  ;;  %v109_v55 = vadd.f32 %v106_v52, %v44_v4  ;;  %v110_v56 = vadd.f32 %v107_v53, %v45_v5 }
  0xb8   :  { %111 = vst [vmem:[#allocation7] sm:$0xff] %v108_v54  ;;  %112 = vst [vmem:[#allocation7 + $0x8] sm:$0xff] %v109_v55 }
  0xb9   :  { %113 = vst [vmem:[#allocation7 + $0x10] sm:$0xff] %v110_v56 }
  0xba   :  { %181 = shalt.err (!%p178_p0)
}
  0xbb   :  { %123 = dma.vmem_to_hbm [thread:$0]  %s121_s30, 384, %s244_s4, [#allocation4]  }
  0xbc   :  { %194 = dma.done.wait [#allocation4], 384  }
  0xbd   :  { %195 = vsyncadd [#allocation4], 4294966912 }
  0xbe   :  { %127 = vsyncpa [#allocation3], 1 }
  0xbf   :  { %128 = vsyncpa [#allocation4], 1 }
  0xc0   :  { %129 = vsyncpa [#allocation5], 1 }

</bundles_post_ra>
